<compile_context>
chip_gen: v7x
topology: tpu7x:2x2x1
jax: 0.10.0
libtpu: 0.0.40
codegen_flags: <defaults>
</compile_context>

<pallas_src>
import functools

import jax
import jax.numpy as jnp
from jax.experimental import pallas as pl
from jax.experimental.pallas import tpu as pltpu

IN_FEATURES = 28 * 28   # 784
HIDDEN = 128
NUM_CLASSES = 10

K_PAD = 896             # 784 rounded up to a multiple of 128
C_PAD = 128             # class dim rounded up to a full lane tile
NEG_BIG = -1.0e30       # bias for padded class columns -> exp() underflows to 0


def _round_up(n, m):
    return ((n + m - 1) // m) * m


def _mlp_kernel(x_ref, w1_ref, b1_ref, w2_ref, b2_ref, wf_ref, bf_ref,
                out1_ref, out2_ref):
    x = x_ref[...]                                   # (tb, K_PAD) bf16

    # linear1 + relu1 (bf16 operands, f32 accumulate on the MXU)
    h1 = jnp.dot(x, w1_ref[...], preferred_element_type=jnp.float32)
    h1 = jnp.maximum(h1 + b1_ref[...], 0.0).astype(jnp.bfloat16)

    # linear2 + relu2
    h2 = jnp.dot(h1, w2_ref[...], preferred_element_type=jnp.float32)
    h2 = jnp.maximum(h2 + b2_ref[...], 0.0).astype(jnp.bfloat16)

    # fc (no relu3 in the reference forward); padded class columns get -1e30
    logits = jnp.dot(h2, wf_ref[...], preferred_element_type=jnp.float32)
    logits = logits + bf_ref[...]                    # (tb, C_PAD) f32

    # softmax over the class axis (padded columns contribute exp(-huge) == 0).
    # Exact divide so the probabilities sum to 1 within f32 rounding; the
    # softmax is negligible next to the three matmuls, so no approx recip.
    m = jnp.max(logits, axis=-1, keepdims=True)
    e = jnp.exp(logits - m)
    denom = jnp.sum(e, axis=-1, keepdims=True)
    probs = e / denom

    out1_ref[...] = logits.astype(out1_ref.dtype)
    out2_ref[...] = probs.astype(out2_ref.dtype)


@functools.partial(jax.jit, static_argnames=("block_batch",))
def mlp_forward(x, w1, b1, w2, b2, wf, bf, *, block_batch=256):
    B = x.shape[0]

    # Pick the batch tile: up to `block_batch` rows, but don't over-pad tiny
    # batches (block second-to-last dim must be a multiple of 8).
    tb = min(block_batch, _round_up(B, 8))
    Bp = _round_up(B, tb)
    nb = Bp // tb

    # --- host-side padding / dtype prep (all cheap, fused by XLA) ----------
    x_p = jnp.pad(x.astype(jnp.bfloat16),
                  ((0, Bp - B), (0, K_PAD - IN_FEATURES)))
    w1_p = jnp.pad(w1.astype(jnp.bfloat16),
                   ((0, K_PAD - IN_FEATURES), (0, 0)))
    w2_p = w2.astype(jnp.bfloat16)
    wf_p = jnp.pad(wf.astype(jnp.bfloat16),
                   ((0, 0), (0, C_PAD - NUM_CLASSES)))

    b1_2d = b1.reshape(1, HIDDEN).astype(jnp.float32)
    b2_2d = b2.reshape(1, HIDDEN).astype(jnp.float32)
    bf_2d = jnp.pad(bf.reshape(1, NUM_CLASSES).astype(jnp.float32),
                    ((0, 0), (0, C_PAD - NUM_CLASSES)),
                    constant_values=NEG_BIG)

    const2d = lambda shape: pl.BlockSpec(shape, lambda i: (0, 0))

    flops = 2 * Bp * (K_PAD * HIDDEN + HIDDEN * HIDDEN + HIDDEN * C_PAD)
    bytes_accessed = (x_p.size * 2 + w1_p.size * 2 + w2_p.size * 2
                      + wf_p.size * 2 + (b1_2d.size + b2_2d.size + bf_2d.size) * 4
                      + 2 * Bp * C_PAD * 4)

    out_shapes = (
        jax.ShapeDtypeStruct((Bp, C_PAD), jnp.float32),
        jax.ShapeDtypeStruct((Bp, C_PAD), jnp.float32),
    )

    logits_p, probs_p = pl.pallas_call(
        _mlp_kernel,
        out_shape=out_shapes,
        grid=(nb,),
        in_specs=[
            pl.BlockSpec((tb, K_PAD), lambda i: (i, 0)),     # x: tiled on batch
            const2d((K_PAD, HIDDEN)),                        # w1 (VMEM-resident)
            const2d((1, HIDDEN)),                            # b1
            const2d((HIDDEN, HIDDEN)),                       # w2
            const2d((1, HIDDEN)),                            # b2
            const2d((HIDDEN, C_PAD)),                        # wf
            const2d((1, C_PAD)),                             # bf
        ],
        out_specs=(
            pl.BlockSpec((tb, C_PAD), lambda i: (i, 0)),
            pl.BlockSpec((tb, C_PAD), lambda i: (i, 0)),
        ),
        compiler_params=pltpu.CompilerParams(
            dimension_semantics=("parallel",)),
        cost_estimate=pl.CostEstimate(
            flops=flops,
            transcendentals=Bp * C_PAD,
            bytes_accessed=bytes_accessed),
    )(x_p, w1_p, b1_2d, w2_p, b2_2d, wf_p, bf_2d)

    # strip batch / class padding
    return (logits_p[:B, :NUM_CLASSES], probs_p[:B, :NUM_CLASSES])


def _init_linear(key, fan_in, fan_out):
    # Deterministic PyTorch-like init: uniform(-1/sqrt(fan_in), 1/sqrt(fan_in)).
    kw, kb = jax.random.split(key)
    bound = 1.0 / (fan_in ** 0.5)
    w = jax.random.uniform(kw, (fan_in, fan_out), jnp.float32, -bound, bound)
    b = jax.random.uniform(kb, (fan_out,), jnp.float32, -bound, bound)
    return w, b


if __name__ == "__main__":
    key = jax.random.PRNGKey(0)
    kx, k1, k2, k3 = jax.random.split(key, 4)

    B = 8
    x = jax.random.normal(kx, (B, IN_FEATURES), jnp.float32)

    w1, b1 = _init_linear(k1, IN_FEATURES, HIDDEN)
    w2, b2 = _init_linear(k2, HIDDEN, HIDDEN)
    wf, bf = _init_linear(k3, HIDDEN, NUM_CLASSES)

    logits, probs = mlp_forward(x, w1, b1, w2, b2, wf, bf)
    jax.block_until_ready((logits, probs))

    # Sanity check against pure-JAX f32 reference (kernel uses bf16 operands
    # with f32 accumulation, so tolerances are loosened accordingly).
    h1 = jnp.maximum(x @ w1 + b1, 0.0)
    h2 = jnp.maximum(h1 @ w2 + b2, 0.0)
    ref_logits = h2 @ wf + bf
    ref_probs = jax.nn.softmax(ref_logits, axis=1)

    assert logits.shape == (B, NUM_CLASSES) and probs.shape == (B, NUM_CLASSES)
    assert jnp.allclose(logits, ref_logits, atol=3e-2, rtol=3e-2), (
        float(jnp.max(jnp.abs(logits - ref_logits))))
    assert jnp.allclose(probs, ref_probs, atol=2e-2, rtol=2e-2), (
        float(jnp.max(jnp.abs(probs - ref_probs))))
    # Exact softmax divide -> rows sum to 1 within f32 rounding.
    assert jnp.allclose(jnp.sum(probs, axis=1), 1.0, atol=1e-3), (
        float(jnp.max(jnp.abs(jnp.sum(probs, axis=1) - 1.0))))

    print("KERNEL_OK")
</pallas_src>

<mosaic_0001>
module attributes {stable_mosaic.version = 11 : i64} {
  func.func @_mlp_kernel(%arg0: i32, %arg1: memref<8x896xbf16, #tpu.memory_space<vmem>>, %arg2: memref<896x128xbf16, #tpu.memory_space<vmem>>, %arg3: memref<1x128xf32, #tpu.memory_space<vmem>>, %arg4: memref<128x128xbf16, #tpu.memory_space<vmem>>, %arg5: memref<1x128xf32, #tpu.memory_space<vmem>>, %arg6: memref<128x128xbf16, #tpu.memory_space<vmem>>, %arg7: memref<1x128xf32, #tpu.memory_space<vmem>>, %arg8: memref<8x128xf32, #tpu.memory_space<vmem>>, %arg9: memref<8x128xf32, #tpu.memory_space<vmem>>) attributes {dimension_semantics = [#tpu.dimension_semantics<parallel>], iteration_bounds = array<i64: 1>, scalar_prefetch = 0 : i64, scratch_operands = 0 : i64, tpu.core_type = #tpu.core_type<tc>, window_params = [{transform_indices = @transform_0, window_bounds = array<i64: 8, 896>}, {pipeline_mode = #tpu.pipeline_mode<synchronous>, transform_indices = @transform_1, window_bounds = array<i64: 896, 128>}, {pipeline_mode = #tpu.pipeline_mode<synchronous>, transform_indices = @transform_2, window_bounds = array<i64: 1, 128>}, {pipeline_mode = #tpu.pipeline_mode<synchronous>, transform_indices = @transform_3, window_bounds = array<i64: 128, 128>}, {pipeline_mode = #tpu.pipeline_mode<synchronous>, transform_indices = @transform_4, window_bounds = array<i64: 1, 128>}, {pipeline_mode = #tpu.pipeline_mode<synchronous>, transform_indices = @transform_5, window_bounds = array<i64: 128, 128>}, {pipeline_mode = #tpu.pipeline_mode<synchronous>, transform_indices = @transform_6, window_bounds = array<i64: 1, 128>}, {transform_indices = @transform_7, window_bounds = array<i64: 8, 128>}, {transform_indices = @transform_8, window_bounds = array<i64: 8, 128>}]} {
    %c0 = arith.constant 0 : index
    %c0_0 = arith.constant 0 : index
    %0 = vector.load %arg1[%c0, %c0_0] : memref<8x896xbf16, #tpu.memory_space<vmem>>, vector<8x896xbf16>
    %c0_1 = arith.constant 0 : index
    %c0_2 = arith.constant 0 : index
    %1 = vector.load %arg2[%c0_1, %c0_2] : memref<896x128xbf16, #tpu.memory_space<vmem>>, vector<896x128xbf16>
    %cst = arith.constant dense<0.000000e+00> : vector<8x128xf32>
    %2 = tpu.matmul %0, %1, %cst {dimension_numbers = #tpu.dot_dimension_numbers<[1], [0], [0], [1], [0, 0, 1, 1], [], []>} : vector<8x896xbf16>, vector<896x128xbf16>, vector<8x128xf32> -> vector<8x128xf32>
    %c0_3 = arith.constant 0 : index
    %c0_4 = arith.constant 0 : index
    %3 = vector.load %arg3[%c0_3, %c0_4] : memref<1x128xf32, #tpu.memory_space<vmem>>, vector<1x128xf32>
    %4 = vector.broadcast %3 : vector<1x128xf32> to vector<8x128xf32>
    %5 = arith.addf %2, %4 : vector<8x128xf32>
    %cst_5 = arith.constant 0.000000e+00 : f32
    %6 = vector.broadcast %cst_5 : f32 to vector<8x128xf32>
    %7 = arith.maximumf %5, %6 : vector<8x128xf32>
    %8 = arith.truncf %7 : vector<8x128xf32> to vector<8x128xbf16>
    %c0_6 = arith.constant 0 : index
    %c0_7 = arith.constant 0 : index
    %9 = vector.load %arg4[%c0_6, %c0_7] : memref<128x128xbf16, #tpu.memory_space<vmem>>, vector<128x128xbf16>
    %cst_8 = arith.constant dense<0.000000e+00> : vector<8x128xf32>
    %10 = tpu.matmul %8, %9, %cst_8 {dimension_numbers = #tpu.dot_dimension_numbers<[1], [0], [0], [1], [0, 0, 1, 1], [], []>} : vector<8x128xbf16>, vector<128x128xbf16>, vector<8x128xf32> -> vector<8x128xf32>
    %c0_9 = arith.constant 0 : index
    %c0_10 = arith.constant 0 : index
    %11 = vector.load %arg5[%c0_9, %c0_10] : memref<1x128xf32, #tpu.memory_space<vmem>>, vector<1x128xf32>
    %12 = vector.broadcast %11 : vector<1x128xf32> to vector<8x128xf32>
    %13 = arith.addf %10, %12 : vector<8x128xf32>
    %cst_11 = arith.constant 0.000000e+00 : f32
    %14 = vector.broadcast %cst_11 : f32 to vector<8x128xf32>
    %15 = arith.maximumf %13, %14 : vector<8x128xf32>
    %16 = arith.truncf %15 : vector<8x128xf32> to vector<8x128xbf16>
    %c0_12 = arith.constant 0 : index
    %c0_13 = arith.constant 0 : index
    %17 = vector.load %arg6[%c0_12, %c0_13] : memref<128x128xbf16, #tpu.memory_space<vmem>>, vector<128x128xbf16>
    %cst_14 = arith.constant dense<0.000000e+00> : vector<8x128xf32>
    %18 = tpu.matmul %16, %17, %cst_14 {dimension_numbers = #tpu.dot_dimension_numbers<[1], [0], [0], [1], [0, 0, 1, 1], [], []>} : vector<8x128xbf16>, vector<128x128xbf16>, vector<8x128xf32> -> vector<8x128xf32>
    %c0_15 = arith.constant 0 : index
    %c0_16 = arith.constant 0 : index
    %19 = vector.load %arg7[%c0_15, %c0_16] : memref<1x128xf32, #tpu.memory_space<vmem>>, vector<1x128xf32>
    %20 = vector.broadcast %19 : vector<1x128xf32> to vector<8x128xf32>
    %21 = arith.addf %18, %20 : vector<8x128xf32>
    %cst_17 = arith.constant dense<0xFF800000> : vector<8xf32>
    %22 = vector.multi_reduction <maximumf>, %21, %cst_17 [1] : vector<8x128xf32> to vector<8xf32>
    %23 = vector.shape_cast %22 : vector<8xf32> to vector<8x1xf32>
    %24 = vector.broadcast %23 : vector<8x1xf32> to vector<8x128xf32>
    %25 = arith.subf %21, %24 : vector<8x128xf32>
    %26 = math.exp %25 : vector<8x128xf32>
    %cst_18 = arith.constant dense<0.000000e+00> : vector<8xf32>
    %27 = vector.multi_reduction <add>, %26, %cst_18 [1] : vector<8x128xf32> to vector<8xf32>
    %28 = vector.shape_cast %27 : vector<8xf32> to vector<8x1xf32>
    %29 = vector.broadcast %28 : vector<8x1xf32> to vector<8x128xf32>
    %30 = arith.divf %26, %29 : vector<8x128xf32>
    %c0_19 = arith.constant 0 : index
    %c0_20 = arith.constant 0 : index
    %31 = vector.load %arg8[%c0_19, %c0_20] : memref<8x128xf32, #tpu.memory_space<vmem>>, vector<8x128xf32>
    tpu.vector_store %arg8[%c0_19, %c0_20], %21 {strides = array<i32>} : memref<8x128xf32, #tpu.memory_space<vmem>>, vector<8x128xf32>,
    %c0_21 = arith.constant 0 : index
    %c0_22 = arith.constant 0 : index
    %32 = vector.load %arg9[%c0_21, %c0_22] : memref<8x128xf32, #tpu.memory_space<vmem>>, vector<8x128xf32>
    tpu.vector_store %arg9[%c0_21, %c0_22], %30 {strides = array<i32>} : memref<8x128xf32, #tpu.memory_space<vmem>>, vector<8x128xf32>,
    return
  }
  func.func @transform_0(%arg0: i32) -> (i32, i32) {
    %c0_i32 = arith.constant 0 : i32
    %c0_i32_0 = arith.constant 0 : i32
    return %arg0, %c0_i32 : i32, i32
  }
  func.func @transform_1(%arg0: i32) -> (i32, i32) {
    %c0_i32 = arith.constant 0 : i32
    %c0_i32_0 = arith.constant 0 : i32
    %c0_i32_1 = arith.constant 0 : i32
    return %c0_i32, %c0_i32_0 : i32, i32
  }
  func.func @transform_2(%arg0: i32) -> (i32, i32) {
    %c0_i32 = arith.constant 0 : i32
    %c0_i32_0 = arith.constant 0 : i32
    %c0_i32_1 = arith.constant 0 : i32
    return %c0_i32, %c0_i32_0 : i32, i32
  }
  func.func @transform_3(%arg0: i32) -> (i32, i32) {
    %c0_i32 = arith.constant 0 : i32
    %c0_i32_0 = arith.constant 0 : i32
    %c0_i32_1 = arith.constant 0 : i32
    return %c0_i32, %c0_i32_0 : i32, i32
  }
  func.func @transform_4(%arg0: i32) -> (i32, i32) {
    %c0_i32 = arith.constant 0 : i32
    %c0_i32_0 = arith.constant 0 : i32
    %c0_i32_1 = arith.constant 0 : i32
    return %c0_i32, %c0_i32_0 : i32, i32
  }
  func.func @transform_5(%arg0: i32) -> (i32, i32) {
    %c0_i32 = arith.constant 0 : i32
    %c0_i32_0 = arith.constant 0 : i32
    %c0_i32_1 = arith.constant 0 : i32
    return %c0_i32, %c0_i32_0 : i32, i32
  }
  func.func @transform_6(%arg0: i32) -> (i32, i32) {
    %c0_i32 = arith.constant 0 : i32
    %c0_i32_0 = arith.constant 0 : i32
    %c0_i32_1 = arith.constant 0 : i32
    return %c0_i32, %c0_i32_0 : i32, i32
  }
  func.func @transform_7(%arg0: i32) -> (i32, i32) {
    %c0_i32 = arith.constant 0 : i32
    %c0_i32_0 = arith.constant 0 : i32
    return %arg0, %c0_i32 : i32, i32
  }
  func.func @transform_8(%arg0: i32) -> (i32, i32) {
    %c0_i32 = arith.constant 0 : i32
    %c0_i32_0 = arith.constant 0 : i32
    return %arg0, %c0_i32 : i32, i32
  }
}

</mosaic_0001>

<bundles_post_ra>
// kernel: mlp_forward.1
= control target key start
LH: loop header
LB: loop body
LE: loop exit
PB: predicated region body
PF: predicated region fallthrough
CT: control target
= control target key end

     0   :  { %14 = vsyncpa [#allocation3], 0  ;;  %v1310_v42 = vmov 0.0   ;;  %vm1311_vm0 = vmmov 0   ;;  %s1650_s0 = inlined_call_operand.vmem [shape: bf16[8,896], index: 0, kind: input, shape index: {}]   ;;  %s1651_s1 = inlined_call_operand.vmem [shape: bf16[896,128], index: 1, kind: input, shape index: {}]   ;;  %s1652_s2 = inlined_call_operand.vmem [shape: f32[1,128], index: 2, kind: input, shape index: {}]   ;;  %s1653_s3 = inlined_call_operand.vmem [shape: bf16[128,128], index: 3, kind: input, shape index: {}]   ;;  %s1654_s4 = inlined_call_operand.vmem [shape: f32[1,128], index: 4, kind: input, shape index: {}]   ;;  %s1655_s5 = inlined_call_operand.vmem [shape: bf16[128,128], index: 5, kind: input, shape index: {}]   ;;  %s1656_s6 = inlined_call_operand.vmem [shape: f32[1,128], index: 6, kind: input, shape index: {}]   ;;  %s1657_s7 = inlined_call_operand.hbm [shape: f32[8,128], index: 7, kind: output, shape index: {0}]   ;;  %s1658_s8 = inlined_call_operand.hbm [shape: f32[8,128], index: 8, kind: output, shape index: {1}]  }
   0x1   :  { %v1179_v0 = vld [vmem:[%s1651_s1 + $0x40] sm:$0xff]   ;;  %v1183_v4 = vld [vmem:[%s1651_s1 + $0x48] sm:$0xff]   ;;  %v1187_v8 = vld [vmem:[%s1651_s1 + $0x50] sm:$0xff]  }
   0x2   :  { %v1180_v1 = vld [vmem:[%s1651_s1] sm:$0xff]   ;;  %1022 = vmatprep.subr.bf16.mxu0 %v1179_v0  ;;  %v1184_v5 = vld [vmem:[%s1651_s1 + $0x8] sm:$0xff]   ;;  %v1188_v9 = vld [vmem:[%s1651_s1 + $0x10] sm:$0xff]  }
   0x3   :  { %v1181_v2 = vld [vmem:[%s1651_s1 + $0xc0] sm:$0xff]   ;;  %1023 = vmatpush3.bf16.msra.mxu0 %v1180_v1  ;;  %v1185_v6 = vld [vmem:[%s1651_s1 + $0xc8] sm:$0xff]   ;;  %v1189_v10 = vld [vmem:[%s1651_s1 + $0xd0] sm:$0xff]  }
   0x4   :  { %v1182_v3 = vld [vmem:[%s1651_s1 + $0x80] sm:$0xff]   ;;  %1044 = vmatprep.subr.bf16.mxu1 %v1181_v2  ;;  %1024 = vmatprep.subr.bf16.mxu0 %v1183_v4  ;;  %v1186_v7 = vld [vmem:[%s1651_s1 + $0x88] sm:$0xff]   ;;  %v1190_v11 = vld [vmem:[%s1651_s1 + $0x90] sm:$0xff]  }
   0x5   :  { %1045 = vmatpush3.bf16.msra.mxu1 %v1182_v3  ;;  %v1191_v12 = vld [vmem:[%s1651_s1 + $0x58] sm:$0xff]   ;;  %v1195_v16 = vld [vmem:[%s1651_s1 + $0x60] sm:$0xff]   ;;  %v1199_v20 = vld [vmem:[%s1651_s1 + $0x68] sm:$0xff]  }
   0x6   :  { %1046 = vmatprep.subr.bf16.mxu1 %v1185_v6  ;;  %v1192_v13 = vld [vmem:[%s1651_s1 + $0x18] sm:$0xff]   ;;  %v1196_v17 = vld [vmem:[%s1651_s1 + $0x20] sm:$0xff]   ;;  %v1200_v21 = vld [vmem:[%s1651_s1 + $0x28] sm:$0xff]  }
   0x7   :  { %1025 = vmatpush3.bf16.msra.mxu0 %v1184_v5  ;;  %v1193_v14 = vld [vmem:[%s1651_s1 + $0xd8] sm:$0xff]   ;;  %v1197_v18 = vld [vmem:[%s1651_s1 + $0xe0] sm:$0xff]   ;;  %v1201_v22 = vld [vmem:[%s1651_s1 + $0xe8] sm:$0xff]  }
   0x8   :  { %1026 = vmatprep.subr.bf16.mxu0 %v1187_v8  ;;  %v1194_v15 = vld [vmem:[%s1651_s1 + $0x98] sm:$0xff]   ;;  %v1198_v19 = vld [vmem:[%s1651_s1 + $0xa0] sm:$0xff]   ;;  %v1202_v23 = vld [vmem:[%s1651_s1 + $0xa8] sm:$0xff]  }
   0x9   :  { %1047 = vmatpush3.bf16.msra.mxu1 %v1186_v7  ;;  %v1203_v24 = vld [vmem:[%s1651_s1 + $0x70] sm:$0xff]   ;;  %v1207_v28 = vld [vmem:[%s1651_s1 + $0x78] sm:$0xff]   ;;  %v31_v31 = vld [vmem:[%s1650_s0] sm:$0xff] }
   0xa   :  { %1048 = vmatprep.subr.bf16.mxu1 %v1189_v10  ;;  %v1204_v25 = vld [vmem:[%s1651_s1 + $0x30] sm:$0xff]   ;;  %v1208_v29 = vld [vmem:[%s1651_s1 + $0x38] sm:$0xff]   ;;  %v941_v32 = vcombine.low %v31_v31, %v31_v31  ;;  %v942_v33 = vcombine.high %v31_v31, %v31_v31  ;;  %v1213_v35 = vld [vmem:[%s1651_s1 + $0x140] sm:$0xff]  }
   0xb   :  { %1027 = vmatpush3.bf16.msra.mxu0 %v1188_v9  ;;  %v1205_v26 = vld [vmem:[%s1651_s1 + $0xf0] sm:$0xff]   ;;  %v1209_v30 = vld [vmem:[%s1651_s1 + $0xf8] sm:$0xff]   ;;  %v32_v36 = vld [vmem:[%s1650_s0 + $0x8] sm:$0xff] }
   0xc   :  { %1028 = vmatprep.subr.bf16.mxu0 %v1191_v12  ;;  %v1206_v27 = vld [vmem:[%s1651_s1 + $0xb0] sm:$0xff]   ;;  %v1212_v34 = vld [vmem:[%s1651_s1 + $0xb8] sm:$0xff]   ;;  %547 = vmatprep.mubr.bf16.mxu0 %v942_v33  ;;  %v943_v37 = vcombine.low %v32_v36, %v32_v36  ;;  %v944_v38 = vcombine.high %v32_v36, %v32_v36  ;;  %v1216_v39 = vld [vmem:[%s1651_s1 + $0x100] sm:$0xff]  }
   0xd   :  { %1049 = vmatpush3.bf16.msra.mxu1 %v1190_v11  ;;  %v1217_v40 = vld [vmem:[%s1651_s1 + $0x180] sm:$0xff]   ;;  %v1218_v41 = vld [vmem:[%s1651_s1 + $0x148] sm:$0xff]   ;;  %v1221_v45 = vld [vmem:[%s1651_s1 + $0x150] sm:$0xff]  }
   0xe   :  { %1050 = vmatprep.subr.bf16.mxu1 %v1193_v14  ;;  %587 = vmatprep.mubr.bf16.mxu1 %v944_v38  ;;  %v1219_v43 = vld [vmem:[%s1651_s1 + $0x108] sm:$0xff]   ;;  %v1222_v46 = vld [vmem:[%s1651_s1 + $0x110] sm:$0xff]   ;;  %v1224_v48 = vld [vmem:[%s1651_s1 + $0x158] sm:$0xff]  }
   0xf   :  { %1029 = vmatpush3.bf16.msra.mxu0 %v1192_v13  ;;  %v1220_v44 = vld [vmem:[%s1651_s1 + $0x188] sm:$0xff]   ;;  %v1223_v47 = vld [vmem:[%s1651_s1 + $0x190] sm:$0xff]   ;;  %v1225_v49 = vld [vmem:[%s1651_s1 + $0x118] sm:$0xff]  }
  0x10   :  { %1030 = vmatprep.subr.bf16.mxu0 %v1195_v16  ;;  %v1227_v50 = vld [vmem:[%s1651_s1 + $0x160] sm:$0xff]   ;;  %v1226_v51 = vld [vmem:[%s1651_s1 + $0x198] sm:$0xff]   ;;  %v1230_v53 = vld [vmem:[%s1651_s1 + $0x168] sm:$0xff]  }
  0x11   :  { %1051 = vmatpush3.bf16.msra.mxu1 %v1194_v15  ;;  %v1228_v52 = vld [vmem:[%s1651_s1 + $0x120] sm:$0xff]   ;;  %v1231_v55 = vld [vmem:[%s1651_s1 + $0x128] sm:$0xff]   ;;  %v1233_v56 = vld [vmem:[%s1651_s1 + $0x170] sm:$0xff]  }
  0x12   :  { %1052 = vmatprep.subr.bf16.mxu1 %v1197_v18  ;;  %v1229_v54 = vld [vmem:[%s1651_s1 + $0x1a0] sm:$0xff]   ;;  %v1232_v57 = vld [vmem:[%s1651_s1 + $0x1a8] sm:$0xff]   ;;  %v1234_v58 = vld [vmem:[%s1651_s1 + $0x130] sm:$0xff]  }
  0x13   :  { %1031 = vmatpush3.bf16.msra.mxu0 %v1196_v17  ;;  %v33_v59 = vld [vmem:[%s1650_s0 + $0x10] sm:$0xff]  ;;  %v1236_v62 = vld [vmem:[%s1651_s1 + $0x178] sm:$0xff]  }
  0x14   :  { %1032 = vmatprep.subr.bf16.mxu0 %v1199_v20  ;;  %v1235_v60 = vld [vmem:[%s1651_s1 + $0x1b0] sm:$0xff]   ;;  %v946_v61 = vcombine.high %v33_v59, %v33_v59  ;;  %v1237_v63 = vld [vmem:[%s1651_s1 + $0x138] sm:$0xff]   ;;  %v945_v1 = vcombine.low %v33_v59, %v33_v59 }
  0x15   :  { %1053 = vmatpush3.bf16.msra.mxu1 %v1198_v19  ;;  %v1240_v0 = vld [vmem:[%s1651_s1 + $0x1b8] sm:$0xff]  }
  0x16   :  { %1054 = vmatprep.subr.bf16.mxu1 %v1201_v22  ;;  %v1241_v2 = vld [vmem:[%s1650_s0 + $0x18] ss:$0 sps:$4 sm:$0xff]  }
  0x17   :  { %1033 = vmatpush3.bf16.msra.mxu0 %v1200_v21 }
  0x18   :  { %1034 = vmatprep.subr.bf16.mxu0 %v1203_v24 }
  0x19   :  { %1055 = vmatpush3.bf16.msra.mxu1 %v1202_v23 }
  0x1a   :  { %1056 = vmatprep.subr.bf16.mxu1 %v1205_v26 }
  0x1b   :  { %1035 = vmatpush3.bf16.msra.mxu0 %v1204_v25 }
  0x1c   :  { %1036 = vmatprep.subr.bf16.mxu0 %v1207_v28 }
  0x1d   :  { %1057 = vmatpush3.bf16.msra.mxu1 %v1206_v27 }
  0x1e   :  { %1058 = vmatprep.subr.bf16.mxu1 %v1209_v30 }
  0x1f   :  { %1037 = vmatpush3.bf16.msra.mxu0 %v1208_v29 }
  0x20   :  { %1066 = vmatprep.subr.bf16.mxu0 %v1213_v35 }
  0x21   :  { %1059 = vmatpush3.bf16.msra.mxu1 %v1212_v34 }
  0x22   :  { %548 = vmatmul.mubr.bf16.vlgmr.msra.gmra.mrb[0].mxu0 %v941_v32  ;;  %1115 = vmatprep.subr.bf16.mxu1 %v1310_v42 }
  0x23   :  { %1067 = vmatpush3.bf16.msra.mxu0 %v1216_v39  ;;  %627 = vmatprep.mubr.bf16.mxu0 %v946_v61 }
  0x24   :  { %588 = vmatmul.mubr.bf16.vlgmr.msra.gmra.mrb[0].mxu1 %v943_v37  ;;  %1068 = vmatprep.subr.bf16.mxu0 %v1218_v41 }
  0x25   :  { %1116 = vmatpush3.bf16.msra.mxu1 %v1217_v40  ;;  %1131 = vmatprep.mubr.msk.bf16.mxu1 %vm1311_vm0, %v1310_v42 }
  0x26   :  { %1117 = vmatprep.subr.bf16.mxu1 %v1310_v42 }
  0x27   :  { %1069 = vmatpush3.bf16.msra.mxu0 %v1219_v43 }
  0x28   :  { %1070 = vmatprep.subr.bf16.mxu0 %v1221_v45 }
  0x29   :  { %1118 = vmatpush3.bf16.msra.mxu1 %v1220_v44 }
  0x2a   :  { %1119 = vmatprep.subr.bf16.mxu1 %v1310_v42 }
  0x2b   :  { %1071 = vmatpush3.bf16.msra.mxu0 %v1222_v46 }
  0x2c   :  { %1072 = vmatprep.subr.bf16.mxu0 %v1224_v48 }
  0x2d   :  { %1120 = vmatpush3.bf16.msra.mxu1 %v1223_v47 }
  0x2e   :  { %1121 = vmatprep.subr.bf16.mxu1 %v1310_v42 }
  0x2f   :  { %1073 = vmatpush3.bf16.msra.mxu0 %v1225_v49 }
  0x30   :  { %1074 = vmatprep.subr.bf16.mxu0 %v1227_v50 }
  0x31   :  { %1122 = vmatpush3.bf16.msra.mxu1 %v1226_v51 }
  0x32   :  { %1123 = vmatprep.subr.bf16.mxu1 %v1310_v42 }
  0x33   :  { %1075 = vmatpush3.bf16.msra.mxu0 %v1228_v52 }
  0x34   :  { %1076 = vmatprep.subr.bf16.mxu0 %v1230_v53 }
  0x35   :  { %1124 = vmatpush3.bf16.msra.mxu1 %v1229_v54 }
  0x36   :  { %1125 = vmatprep.subr.bf16.mxu1 %v1310_v42 }
  0x37   :  { %1077 = vmatpush3.bf16.msra.mxu0 %v1231_v55 }
  0x38   :  { %1078 = vmatprep.subr.bf16.mxu0 %v1233_v56 }
  0x39   :  { %1126 = vmatpush3.bf16.msra.mxu1 %v1232_v57 }
  0x3a   :  { %1127 = vmatprep.subr.bf16.mxu1 %v1310_v42 }
  0x3b   :  { %1079 = vmatpush3.bf16.msra.mxu0 %v1234_v58 }
  0x3c   :  { %1080 = vmatprep.subr.bf16.mxu0 %v1236_v62 }
  0x3d   :  { %1128 = vmatpush3.bf16.msra.mxu1 %v1235_v60 }
  0x3e   :  { %1129 = vmatprep.subr.bf16.mxu1 %v1310_v42 }
  0x3f   :  { %1081 = vmatpush3.bf16.msra.mxu0 %v1237_v63 }
  0x40   :  { %1135 = vmatprep.subr.bf16.mxu0 %v1310_v42 }
  0x41   :  { %1130 = vmatpush3.bf16.msra.mxu1 %v1240_v0 }
  0x42   :  { %628 = vmatmul.mubr.bf16.vlgmr.msra.gmra.mrb[4].mxu0 %v945_v1  ;;  %1155 = vmatprep.subr.bf16.mxu1 %v1310_v42 }
  0x43   :  { %1151 = vmatprep.mubr.msk.bf16.mxu0 %vm1311_vm0, %v1310_v42 }
  0x44   :  { %15 = vsyncpa [#allocation5], 0  ;;  %1132 = vmatmul.mubr.bf16.vlgmr.msra.gmra.mrb[4].mxu1 %v1241_v2  ;;  %v1242_v3 = vld [vmem:[%s1653_s3] sm:$0xff]   ;;  %v1243_v4 = vld [vmem:[%s1653_s3 + $0x8] sm:$0xff]  }
  0x45   :  { %1171 = vmatprep.mubr.msk.bf16.mxu1 %vm1311_vm0, %v1310_v42  ;;  %1136 = vmatpush3.bf16.msra.mxu0 %v1242_v3  ;;  %v1244_v5 = vld [vmem:[%s1653_s3 + $0x10] sm:$0xff]   ;;  %v1245_v6 = vld [vmem:[%s1653_s3 + $0x18] sm:$0xff]   ;;  %v1246_v7 = vld [vmem:[%s1653_s3 + $0x20] sm:$0xff]  }
  0x46   :  { %1137 = vmatprep.subr.bf16.mxu0 %v1310_v42  ;;  %v1247_v8 = vld [vmem:[%s1653_s3 + $0x28] sm:$0xff]   ;;  %v1248_v9 = vld [vmem:[%s1653_s3 + $0x30] sm:$0xff]   ;;  %v1249_v10 = vld [vmem:[%s1653_s3 + $0x38] sm:$0xff]  }
  0x47   :  { %v1250_v11 = vld [vmem:[%s1655_s5] sm:$0xff]   ;;  %v1251_v12 = vld [vmem:[%s1655_s5 + $0x8] sm:$0xff]   ;;  %v1252_v13 = vld [vmem:[%s1655_s5 + $0x10] sm:$0xff]  }
  0x48   :  { %1156 = vmatpush3.bf16.msra.mxu1 %v1250_v11  ;;  %v1253_v14 = vld [vmem:[%s1655_s5 + $0x18] sm:$0xff]   ;;  %v1254_v15 = vld [vmem:[%s1655_s5 + $0x20] sm:$0xff]   ;;  %v1255_v16 = vld [vmem:[%s1655_s5 + $0x28] sm:$0xff]  }
  0x49   :  { %1138 = vmatpush3.bf16.msra.mxu0 %v1243_v4  ;;  %1157 = vmatprep.subr.bf16.mxu1 %v1310_v42  ;;  %v940_v18 = vld [vmem:[%s1652_s2] ss:$0 sm:$0xff]  ;;  %v1256_v44 = vld [vmem:[%s1655_s5 + $0x30] sm:$0xff]   ;;  %v1257_v45 = vld [vmem:[%s1655_s5 + $0x38] sm:$0xff]  }
  0x4a   :  { %1139 = vmatprep.subr.bf16.mxu0 %v1310_v42  ;;  %v1004_v46 = vld [vmem:[%s1654_s4] ss:$0 sm:$0xff]  ;;  %s1312_s4 = smov [#allocation2]  }
  0x4b   :  { %s918_s5 = sshll.u32 %s1312_s4, 4  ;;  %s919_s5 = int_to_ptr.vmem [resolvable:$true] %s918_s5 }
  0x4c   :  { %1158 = vmatpush3.bf16.msra.mxu1 %v1251_v12  ;;  %s1262_s25 = scalar_lea.vmem %s919_s5, 128  ;;  %p1267_p1 = scmp.lt.s32.totalorder %s919_s5, %s919_s5 }
  0x4d   :  { %1140 = vmatpush3.bf16.msra.mxu0 %v1244_v5  ;;  %1159 = vmatprep.subr.bf16.mxu1 %v1310_v42  ;;  %p1263_p0 = scmp.ne.s32.totalorder %s919_s5, %s1262_s25  ;;  %p1268_p2 = scmp.lt.s32.totalorder %s1262_s25, %s1262_s25 }
  0x4e   :  { %1141 = vmatprep.subr.bf16.mxu0 %v1310_v42 }
  0x4f   :  { %p1269_p3 = por %p1268_p2, %p1267_p1 }
  0x50   :  { %1160 = vmatpush3.bf16.msra.mxu1 %v1252_v13 }
  0x51   :  { %1142 = vmatpush3.bf16.msra.mxu0 %v1245_v6  ;;  %1161 = vmatprep.subr.bf16.mxu1 %v1310_v42  ;;  %p1270_p4 = pnand %p1269_p3, %p1263_p0 }
  0x52   :  { %1143 = vmatprep.subr.bf16.mxu0 %v1310_v42 }
  0x54   :  { %1162 = vmatpush3.bf16.msra.mxu1 %v1253_v14 }
  0x55   :  { %1144 = vmatpush3.bf16.msra.mxu0 %v1246_v7  ;;  %1163 = vmatprep.subr.bf16.mxu1 %v1310_v42 }
  0x56   :  { %1145 = vmatprep.subr.bf16.mxu0 %v1310_v42 }
  0x58   :  { %1164 = vmatpush3.bf16.msra.mxu1 %v1254_v15 }
  0x59   :  { %1146 = vmatpush3.bf16.msra.mxu0 %v1247_v8  ;;  %1165 = vmatprep.subr.bf16.mxu1 %v1310_v42 }
  0x5a   :  { %1147 = vmatprep.subr.bf16.mxu0 %v1310_v42 }
  0x5c   :  { %1166 = vmatpush3.bf16.msra.mxu1 %v1255_v16 }
  0x5d   :  { %1148 = vmatpush3.bf16.msra.mxu0 %v1248_v9  ;;  %1167 = vmatprep.subr.bf16.mxu1 %v1310_v42 }
  0x5e   :  { %1149 = vmatprep.subr.bf16.mxu0 %v1310_v42 }
  0x60   :  { %1168 = vmatpush3.bf16.msra.mxu1 %v1256_v44 }
  0x61   :  { %1150 = vmatpush3.bf16.msra.mxu0 %v1249_v10  ;;  %1169 = vmatprep.subr.bf16.mxu1 %v1310_v42  ;;  %v1013_v42 = vld [vmem:[%s1656_s6] ss:$0 sm:$0xff] }
  0x64   :  { %1170 = vmatpush3.bf16.msra.mxu1 %v1257_v45 }
  0xf5   :  { %v1038_v17 = vpop.f32.mrb[0].mxu0 }
  0xf6   :  { %v1039_v19 = vpop.f32.mrb[1].mxu0 }
  0xf7   :  { %v1040_v20 = vadd.f32 %v1039_v19, %v1038_v17  ;;  %v1041_v21 = vpop.f32.mrb[2].mxu0  ;;  %v1060_v22 = vpop.f32.mrb[0].mxu1 }
  0xf8   :  { %v1042_v23 = vpop.f32.mrb[3].mxu0  ;;  %v1061_v24 = vpop.f32.mrb[1].mxu1 }
  0xf9   :  { %v550_v25 = vadd.f32 %v1040_v20, %v940_v18  ;;  %v1062_v26 = vadd.f32 %v1061_v24, %v1060_v22  ;;  %v1063_v27 = vpop.f32.mrb[2].mxu1 }
  0xfa   :  { %v1064_v28 = vpop.f32.mrb[3].mxu1 }
  0xfb   :  { %v590_v29 = vadd.f32 %v1062_v26, %v550_v25 }
 0x115   :  { %v1082_v30 = vpop.f32.mrb[4].mxu0 }
 0x116   :  { %v1083_v31 = vpop.f32.mrb[5].mxu0 }
 0x117   :  { %v1084_v32 = vadd.f32 %v1083_v31, %v1082_v30  ;;  %v1085_v33 = vpop.f32.mrb[6].mxu0  ;;  %v669_v34 = vpop.f32.mrb[4].mxu1 }
 0x118   :  { %v1086_v35 = vpop.f32.mrb[7].mxu0  ;;  %v1133_v36 = vpop.f32.mrb[5].mxu1 }
 0x119   :  { %v630_v37 = vadd.f32 %v1084_v32, %v590_v29  ;;  %v672_v38 = vpop.f32.mrb[6].mxu1 }
 0x11a   :  { %v1134_v39 = vpop.f32.mrb[7].mxu1 }
 0x11b   :  { %v670_v40 = vadd.f32 %v669_v34, %v630_v37 }
 0x11d   :  { %v675_v41 = vmax.f32 %v670_v40, 0.0 }
 0x11f   :  { %v676_v43 = vpack.c.bf16 %v675_v41, %v675_v41 }
 0x121   :  { %1152 = vmatmul.mubr.bf16.vlgmr.msra.gmra.mrb[8].mxu0 %v676_v43 }
 0x1f4   :  { %v782_v47 = vpop.f32.mrb[8].mxu0 }
 0x1f5   :  { %v783_v48 = vadd.f32 %v1004_v46, %v782_v47  ;;  %v1153_v49 = vpop.f32.mrb[9].mxu0 }
 0x1f6   :  { %v785_v50 = vpop.f32.mrb[10].mxu0 }
 0x1f7   :  { %v788_v51 = vmax.f32 %v783_v48, 0.0  ;;  %v1154_v52 = vpop.f32.mrb[11].mxu0 }
 0x1f9   :  { %v789_v53 = vpack.c.bf16 %v788_v51, %v788_v51 }
 0x1fb   :  { %1172 = vmatmul.mubr.bf16.vlgmr.msra.gmra.mrb[8].mxu1 %v789_v53 }
 0x2ce   :  { %v895_v54 = vpop.f32.mrb[8].mxu1 }
 0x2cf   :  { %v896_v55 = vadd.f32 %v1013_v42, %v895_v54  ;;  %v1173_v56 = vpop.f32.mrb[9].mxu1 }
 0x2d0   :  { %v898_v57 = vpop.f32.mrb[10].mxu1 }
 0x2d1   :  { %910 = vst [vmem:[#allocation2] sm:$0xff] %v896_v55  ;;  %901 = vmax.xlane.f32.xlu0 %v896_v55  ;;  %v1174_v58 = vpop.f32.mrb[11].mxu1 }
 0x35e   :  { %v902_v59 = vpop.xlane.xlu0 %901 }
 0x35f   :  { %v903_v60 = vsub.f32 %v896_v55, %v902_v59 }
 0x361   :  { %v904_v61 = vmul.f32 1.442695, %v903_v60 }
 0x363   :  { %1258 = vpow2.f32 %v904_v61 }
 0x36d   :  { %v1259_v62 = vpop.eup %1258 }
 0x36e   :  { %906 = vadd.xlane.f32.xlu0 %v1259_v62 }
 0x36f   :  { %1273 = shalt.err (!%p1270_p4)
}
 0x370   :  { %s1274_s27 = scalar_lea.hbm %s1657_s7, 128 }
 0x371   :  { %p1275_p5 = scmp.ne.s32.totalorder %s1657_s7, %s1274_s27  ;;  %p1278_p6 = scmp.lt.u32.totalorder %s1274_s27, %s1657_s7 }
 0x373   :  { %p1280_p7 = pnand %p1278_p6, %p1275_p5 }
 0x375   :  { %1283 = shalt.err (!%p1280_p7)
}
 0x376   :  { %921 = dma.vmem_to_hbm [thread:$0]  %s919_s5, 128, %s1657_s7, [#allocation3]  }
 0x377   :  { %s1313_s12 = smov [#allocation4]  }
 0x378   :  { %s928_s3 = sshll.u32 %s1313_s12, 4  ;;  %s929_s3 = int_to_ptr.vmem [resolvable:$true] %s928_s3 }
 0x379   :  { %s1284_s13 = scalar_lea.vmem %s929_s3, 128  ;;  %p1289_p9 = scmp.lt.s32.totalorder %s929_s3, %s929_s3 }
 0x37a   :  { %p1285_p8 = scmp.ne.s32.totalorder %s929_s3, %s1284_s13  ;;  %p1290_p10 = scmp.lt.s32.totalorder %s1284_s13, %s1284_s13 }
 0x37c   :  { %p1291_p11 = por %p1290_p10, %p1289_p9 }
 0x37e   :  { %p1292_p12 = pnand %p1291_p11, %p1285_p8 }
 0x3fb   :  { %v907_v63 = vpop.xlane.xlu0 %906 }
 0x3fc   :  { %1260 = vrcp.f32 %v907_v63 }
 0x406   :  { %v1261_v0 = vpop.eup %1260 }
 0x407   :  { %v909_v1 = vmul.f32 %v1261_v0, %v1259_v62 }
 0x409   :  { %911 = vst [vmem:[#allocation4] sm:$0xff] %v909_v1 }
 0x40a   :  { %1295 = shalt.err (!%p1292_p12)
}
 0x40b   :  { %s1296_s15 = scalar_lea.hbm %s1658_s8, 128 }
 0x40c   :  { %p1297_p13 = scmp.ne.s32.totalorder %s1658_s8, %s1296_s15  ;;  %p1300_p0 = scmp.lt.u32.totalorder %s1296_s15, %s1658_s8 }
 0x40e   :  { %p1302_p1 = pnand %p1300_p0, %p1297_p13 }
 0x410   :  { %1305 = shalt.err (!%p1302_p1)
}
 0x411   :  { %931 = dma.vmem_to_hbm [thread:$0]  %s929_s3, 128, %s1658_s8, [#allocation5]  }
 0x412   :  { %1306 = dma.done.wait [#allocation3], 128  }
 0x413   :  { %1307 = vsyncadd [#allocation3], 4294967168 }
 0x414   :  { %1308 = dma.done.wait [#allocation5], 128  }
 0x415   :  { %1309 = vsyncadd [#allocation5], 4294967168 }
 0x416   :  { %938 = vsyncpa [#allocation3], 1 }
 0x417   :  { %939 = vsyncpa [#allocation5], 1 }

</bundles_post_ra>
